<compile_context>
chip_gen: v7x
topology: tpu7x:2x2x1
jax: 0.10.0
libtpu: 0.0.40
codegen_flags: <defaults>
</compile_context>

<pallas_src>
import functools

import jax
import jax.numpy as jnp
from jax.experimental import pallas as pl
from jax.experimental.pallas import tpu as pltpu


def cbf_mlp_kernel(xT_ref, w1_ref, b1_ref, w2_ref, b2_ref, w3_ref, b3_ref, o_ref):
    """One batch tile of the fused MLP; batch lives on the lane axis.

    xT_ref: (n_dims, TILE_B)   transposed input tile (ragged tail lanes may be garbage)
    w1_ref: (H0, n_dims)   b1_ref: (H0, 1)
    w2_ref: (H1, H0)       b2_ref: (H1, 1)
    w3_ref: (H1, 1)        b3_ref: (1, 1) in SMEM
    o_ref : (1, TILE_B)    lane-dense output row (out-of-range lanes masked by Pallas)

    NOTE: no cross-lane reduction anywhere — required for ragged-tile safety.
    """
    xT = xT_ref[...]

    # input_linear + ReLU : (H0, n_dims) @ (n_dims, TILE_B) -> (H0, TILE_B)
    h1 = jnp.dot(w1_ref[...], xT, preferred_element_type=jnp.float32) + b1_ref[...]
    h1 = jnp.maximum(h1, 0.0)

    # layer_0_linear + ReLU : (H1, H0) @ (H0, TILE_B) -> (H1, TILE_B)
    h2 = jnp.dot(w2_ref[...], h1, preferred_element_type=jnp.float32) + b2_ref[...]
    h2 = jnp.maximum(h2, 0.0)

    # output_linear: degenerate (1, H1) matmul -> VPU broadcast-mul + sublane reduce.
    v = jnp.sum(w3_ref[...] * h2, axis=0, keepdims=True) + b3_ref[0, 0]
    o_ref[...] = v.astype(o_ref.dtype)


def _round_up(a, m):
    return (a + m - 1) // m * m


def _cdiv(a, b):
    return (a + b - 1) // b


def _cbf_pallas_xt(xT, params, tile_b):
    """Core Pallas path. xT: (n_dims, B) float32 -> (B, 1) float32."""
    (w1, b1), (w2, b2), (w3, b3) = params
    n_dims, B = xT.shape
    h0 = w1.shape[0]
    h1d = w2.shape[0]

    # Lane-dense tile: big enough to amortize the ~0.35us per-step pipeline overhead,
    # but capped so there are >= 2 grid steps whenever possible (v7x megacore sharding).
    tb = min(_round_up(tile_b, 128), _round_up(_cdiv(B, 2), 128))
    tb = max(tb, 128)
    num_tiles = _cdiv(B, tb)  # ragged final block allowed; Pallas masks OOB output stores

    cost = pl.CostEstimate(
        flops=2 * B * (n_dims * h0 + h0 * h1d + h1d),
        transcendentals=0,
        bytes_accessed=4 * (n_dims * B + B + w1.size + b1.size
                            + w2.size + b2.size + w3.size + b3.size),
    )

    def resident(shape):  # weights/biases: DMA'd once, stay VMEM-resident across steps
        return pl.BlockSpec(shape, lambda i: (0, 0))

    out = pl.pallas_call(
        cbf_mlp_kernel,
        out_shape=jax.ShapeDtypeStruct((1, B), jnp.float32),
        grid=(num_tiles,),
        in_specs=[
            pl.BlockSpec((n_dims, tb), lambda i: (0, i)),       # x^T tile (pipelined)
            resident((h0, n_dims)),                             # W1
            resident((h0, 1)),                                  # b1
            resident((h1d, h0)),                                # W2
            resident((h1d, 1)),                                 # b2
            resident((h1d, 1)),                                 # w3 column
            pl.BlockSpec(memory_space=pltpu.MemorySpace.SMEM),  # b3 scalar
        ],
        out_specs=pl.BlockSpec((1, tb), lambda i: (0, i)),
        compiler_params=pltpu.CompilerParams(
            dimension_semantics=("parallel",),
            vmem_limit_bytes=32 * 1024 * 1024,  # covers v5e's 16 MiB scoped default
        ),
        cost_estimate=cost,
    )(xT.astype(jnp.float32), w1, b1, w2, b2, w3, b3)

    return out.reshape(B, 1)


@functools.partial(jax.jit, static_argnames=("tile_b",))
def cbf_net_forward(x, params, *, tile_b=65536):
    """x: (B, n_dims) float32 -> (B, 1) float32.

    Does a single (unpadded) x.T copy; prefer `cbf_net_forward_xt` when the caller can
    already provide x in (n_dims, B) layout (zero wrapper copies).
    """
    return _cbf_pallas_xt(x.T, params, tile_b)


@functools.partial(jax.jit, static_argnames=("tile_b",))
def cbf_net_forward_xt(xT, params, *, tile_b=65536):
    """xT: (n_dims, B) float32 -> (B, 1) float32. Zero-copy entry point."""
    return _cbf_pallas_xt(xT, params, tile_b)


def init_linear(key, fan_in, fan_out):
    """torch.nn.Linear-style init (uniform +/- 1/sqrt(fan_in)).

    Returns W in PyTorch layout (fan_out, fan_in) and bias as a (fan_out, 1) column
    (the column form broadcasts across the lane/batch axis inside the kernel).
    """
    kw, kb = jax.random.split(key)
    bound = 1.0 / jnp.sqrt(jnp.float32(fan_in))
    w = jax.random.uniform(kw, (fan_out, fan_in), jnp.float32, -bound, bound)
    b = jax.random.uniform(kb, (fan_out, 1), jnp.float32, -bound, bound)
    return w, b


def make_cbf_params(key, n_dims, hidden_sizes=(8, 16)):
    k1, k2, k3 = jax.random.split(key, 3)
    w1, b1 = init_linear(k1, n_dims, hidden_sizes[0])           # input_linear
    w2, b2 = init_linear(k2, hidden_sizes[0], hidden_sizes[1])  # layer_0_linear
    w3, b3 = init_linear(k3, hidden_sizes[1], 1)                # output_linear
    # Keep the output weight as a (H1, 1) column for the in-kernel broadcast-reduce.
    return (w1, b1), (w2, b2), (w3.T, b3)


def cbf_net_reference(x, params):
    """Pure-JAX reference of the same forward pass (for correctness check)."""
    (w1, b1), (w2, b2), (w3c, b3) = params
    h1 = jnp.maximum(x @ w1.T + b1[:, 0], 0.0)
    h2 = jnp.maximum(h1 @ w2.T + b2[:, 0], 0.0)
    return h2 @ w3c + b3[0, 0]


if __name__ == "__main__":
    key = jax.random.PRNGKey(0)
    k_param, k_x, k_x2 = jax.random.split(key, 3)

    batch = 8
    n_dims = 4
    hidden_sizes = (8, 16)

    params = make_cbf_params(k_param, n_dims, hidden_sizes)

    # Small-shape check (single ragged tile).
    x = jax.random.normal(k_x, (batch, n_dims), jnp.float32)
    out = jax.block_until_ready(cbf_net_forward(x, params))
    ref = cbf_net_reference(x, params)
    assert out.shape == (batch, 1), out.shape
    assert jnp.allclose(out, ref, atol=1e-5, rtol=1e-5), (out, ref)

    # Second check: B not a multiple of 128 and >1 grid step (exercises the ragged final
    # tile and the capped-tile / masked-output path).
    x2 = jax.random.normal(k_x2, (300, n_dims), jnp.float32)
    out2 = jax.block_until_ready(cbf_net_forward(x2, params))
    ref2 = cbf_net_reference(x2, params)
    assert out2.shape == (300, 1), out2.shape
    assert jnp.allclose(out2, ref2, atol=1e-5, rtol=1e-5)

    print("KERNEL_OK")
</pallas_src>

<mosaic_0001>
module attributes {stable_mosaic.version = 11 : i64} {
  func.func @cbf_mlp_kernel(%arg0: i32, %arg1: memref<4x128xf32, #tpu.memory_space<vmem>>, %arg2: memref<8x4xf32, #tpu.memory_space<vmem>>, %arg3: memref<8x1xf32, #tpu.memory_space<vmem>>, %arg4: memref<16x8xf32, #tpu.memory_space<vmem>>, %arg5: memref<16x1xf32, #tpu.memory_space<vmem>>, %arg6: memref<16x1xf32, #tpu.memory_space<vmem>>, %arg7: memref<1x1xf32, #tpu.memory_space<smem>>, %arg8: memref<1x128xf32, #tpu.memory_space<vmem>>) attributes {dimension_semantics = [#tpu.dimension_semantics<parallel>], iteration_bounds = array<i64: 1>, scalar_prefetch = 0 : i64, scratch_operands = 0 : i64, tpu.core_type = #tpu.core_type<tc>, window_params = [{transform_indices = @transform_0, window_bounds = array<i64: 4, 128>}, {pipeline_mode = #tpu.pipeline_mode<synchronous>, transform_indices = @transform_1, window_bounds = array<i64: 8, 4>}, {pipeline_mode = #tpu.pipeline_mode<synchronous>, transform_indices = @transform_2, window_bounds = array<i64: 8, 1>}, {pipeline_mode = #tpu.pipeline_mode<synchronous>, transform_indices = @transform_3, window_bounds = array<i64: 16, 8>}, {pipeline_mode = #tpu.pipeline_mode<synchronous>, transform_indices = @transform_4, window_bounds = array<i64: 16, 1>}, {pipeline_mode = #tpu.pipeline_mode<synchronous>, transform_indices = @transform_5, window_bounds = array<i64: 16, 1>}, {transform_indices = @transform_6, window_bounds = array<i64: 1, 1>}, {transform_indices = @transform_7, window_bounds = array<i64: 1, 128>}]} {
    %c0 = arith.constant 0 : index
    %c0_0 = arith.constant 0 : index
    %0 = vector.load %arg1[%c0, %c0_0] : memref<4x128xf32, #tpu.memory_space<vmem>>, vector<4x128xf32>
    %c0_1 = arith.constant 0 : index
    %c0_2 = arith.constant 0 : index
    %1 = vector.load %arg2[%c0_1, %c0_2] : memref<8x4xf32, #tpu.memory_space<vmem>>, vector<8x4xf32>
    %cst = arith.constant dense<0.000000e+00> : vector<8x128xf32>
    %2 = tpu.matmul %1, %0, %cst {dimension_numbers = #tpu.dot_dimension_numbers<[1], [0], [0], [1], [0, 0, 1, 1], [], []>} : vector<8x4xf32>, vector<4x128xf32>, vector<8x128xf32> -> vector<8x128xf32>
    %c0_3 = arith.constant 0 : index
    %c0_4 = arith.constant 0 : index
    %3 = vector.load %arg3[%c0_3, %c0_4] : memref<8x1xf32, #tpu.memory_space<vmem>>, vector<8x1xf32>
    %4 = vector.broadcast %3 : vector<8x1xf32> to vector<8x128xf32>
    %5 = arith.addf %2, %4 : vector<8x128xf32>
    %cst_5 = arith.constant 0.000000e+00 : f32
    %6 = vector.broadcast %cst_5 : f32 to vector<8x128xf32>
    %7 = arith.maximumf %5, %6 : vector<8x128xf32>
    %c0_6 = arith.constant 0 : index
    %c0_7 = arith.constant 0 : index
    %8 = vector.load %arg4[%c0_6, %c0_7] : memref<16x8xf32, #tpu.memory_space<vmem>>, vector<16x8xf32>
    %cst_8 = arith.constant dense<0.000000e+00> : vector<16x128xf32>
    %9 = tpu.matmul %8, %7, %cst_8 {dimension_numbers = #tpu.dot_dimension_numbers<[1], [0], [0], [1], [0, 0, 1, 1], [], []>} : vector<16x8xf32>, vector<8x128xf32>, vector<16x128xf32> -> vector<16x128xf32>
    %c0_9 = arith.constant 0 : index
    %c0_10 = arith.constant 0 : index
    %10 = vector.load %arg5[%c0_9, %c0_10] : memref<16x1xf32, #tpu.memory_space<vmem>>, vector<16x1xf32>
    %11 = vector.broadcast %10 : vector<16x1xf32> to vector<16x128xf32>
    %12 = arith.addf %9, %11 : vector<16x128xf32>
    %cst_11 = arith.constant 0.000000e+00 : f32
    %13 = vector.broadcast %cst_11 : f32 to vector<16x128xf32>
    %14 = arith.maximumf %12, %13 : vector<16x128xf32>
    %c0_12 = arith.constant 0 : index
    %c0_13 = arith.constant 0 : index
    %15 = vector.load %arg6[%c0_12, %c0_13] : memref<16x1xf32, #tpu.memory_space<vmem>>, vector<16x1xf32>
    %16 = vector.broadcast %15 : vector<16x1xf32> to vector<16x128xf32>
    %17 = arith.mulf %16, %14 : vector<16x128xf32>
    %cst_14 = arith.constant dense<0.000000e+00> : vector<128xf32>
    %18 = vector.multi_reduction <add>, %17, %cst_14 [0] : vector<16x128xf32> to vector<128xf32>
    %19 = vector.shape_cast %18 : vector<128xf32> to vector<1x128xf32>
    %c0_15 = arith.constant 0 : index
    %c0_16 = arith.constant 0 : index
    %20 = memref.load %arg7[%c0_15, %c0_16] : memref<1x1xf32, #tpu.memory_space<smem>>
    %21 = vector.broadcast %20 : f32 to vector<1x128xf32>
    %22 = arith.addf %19, %21 : vector<1x128xf32>
    %c0_17 = arith.constant 0 : index
    %c0_18 = arith.constant 0 : index
    %23 = vector.load %arg8[%c0_17, %c0_18] : memref<1x128xf32, #tpu.memory_space<vmem>>, vector<1x128xf32>
    tpu.vector_store %arg8[%c0_17, %c0_18], %22 {strides = array<i32>} : memref<1x128xf32, #tpu.memory_space<vmem>>, vector<1x128xf32>,
    return
  }
  func.func @transform_0(%arg0: i32) -> (i32, i32) {
    %c0_i32 = arith.constant 0 : i32
    %c0_i32_0 = arith.constant 0 : i32
    return %c0_i32, %arg0 : i32, i32
  }
  func.func @transform_1(%arg0: i32) -> (i32, i32) {
    %c0_i32 = arith.constant 0 : i32
    %c0_i32_0 = arith.constant 0 : i32
    %c0_i32_1 = arith.constant 0 : i32
    return %c0_i32, %c0_i32_0 : i32, i32
  }
  func.func @transform_2(%arg0: i32) -> (i32, i32) {
    %c0_i32 = arith.constant 0 : i32
    %c0_i32_0 = arith.constant 0 : i32
    %c0_i32_1 = arith.constant 0 : i32
    return %c0_i32, %c0_i32_0 : i32, i32
  }
  func.func @transform_3(%arg0: i32) -> (i32, i32) {
    %c0_i32 = arith.constant 0 : i32
    %c0_i32_0 = arith.constant 0 : i32
    %c0_i32_1 = arith.constant 0 : i32
    return %c0_i32, %c0_i32_0 : i32, i32
  }
  func.func @transform_4(%arg0: i32) -> (i32, i32) {
    %c0_i32 = arith.constant 0 : i32
    %c0_i32_0 = arith.constant 0 : i32
    %c0_i32_1 = arith.constant 0 : i32
    return %c0_i32, %c0_i32_0 : i32, i32
  }
  func.func @transform_5(%arg0: i32) -> (i32, i32) {
    %c0_i32 = arith.constant 0 : i32
    %c0_i32_0 = arith.constant 0 : i32
    %c0_i32_1 = arith.constant 0 : i32
    return %c0_i32, %c0_i32_0 : i32, i32
  }
  func.func @transform_6(%arg0: i32) -> (i32, i32) {
    %c0_i32 = arith.constant 0 : i32
    %c0_i32_0 = arith.constant 0 : i32
    %c0_i32_1 = arith.constant 0 : i32
    return %c0_i32, %c0_i32_0 : i32, i32
  }
  func.func @transform_7(%arg0: i32) -> (i32, i32) {
    %c0_i32 = arith.constant 0 : i32
    %c0_i32_0 = arith.constant 0 : i32
    return %c0_i32, %arg0 : i32, i32
  }
}

</mosaic_0001>

<bundles_post_ra>
// kernel: cbf_net_forward.1
= control target key start
LH: loop header
LB: loop body
LE: loop exit
PB: predicated region body
PF: predicated region fallthrough
CT: control target
= control target key end

     0   :  { %vm40_vm0 = vcmask 1043456   ;;  %v301_v2 = vmov 0.0   ;;  %vm302_vm1 = vmmov 0   ;;  %vm36_vm2 = vcmask 31744   ;;  %s387_s0 = inlined_call_operand.vmem [shape: f32[4,8], index: 0, kind: input, shape index: {}]   ;;  %s388_s1 = inlined_call_operand.vmem [shape: f32[8,4], index: 1, kind: input, shape index: {}]   ;;  %s389_s2 = inlined_call_operand.vmem [shape: f32[8,1], index: 2, kind: input, shape index: {}]   ;;  %s390_s3 = inlined_call_operand.vmem [shape: f32[16,8], index: 3, kind: input, shape index: {}]   ;;  %s391_s4 = inlined_call_operand.vmem [shape: f32[16,1], index: 4, kind: input, shape index: {}]   ;;  %s392_s5 = inlined_call_operand.vmem [shape: f32[16,1], index: 5, kind: input, shape index: {}]   ;;  %s393_s6 = inlined_call_operand.<no memory space> [shape: f32[1,1], index: 6, kind: input, shape index: {}]   ;;  %s394_s7 = inlined_call_operand.hbm [shape: f32[1,8], index: 7, kind: output, shape index: {}]  }
   0x1   :  { %v28_v0 = vld [vmem:[%s387_s0] sm:$0xf]  ;;  %261 = vmatprep.subr.mxu0 %v301_v2  ;;  %263 = vmatprep.mubr.msk.f32.mxu0 %vm302_vm1, %v301_v2  ;;  %v303_v4 = vmov 0  }
   0x2   :  { %v29_v1 = vld [vmem:[%s388_s1] sm:$0xff]  ;;  %262 = vmatpush3.msk.msra.mxu0 %vm40_vm0, %v28_v0  ;;  %275 = vset.pattern.permute.xlu0 %v303_v4 }
   0x3   :  { %v30_v3 = vld [vmem:[%s389_s2] sm:$0xff] }
   0x4   :  { %13 = vsyncpa [#allocation4], 0  ;;  %264 = vmatmul.mubr.msk.f32.vlgmr.msra.gmra.mrb[0].mxu0 %vm36_vm2, %v29_v1  ;;  %33 = vperm.xlu0 %275, %v30_v3   ;;  %v117_v5 = vld [vmem:[%s391_s4] sm:$0xff]  ;;  %v214_v6 = vld [vmem:[%s392_s5 + $0x8] sm:$0xff]  ;;  %vm129_vm3 = vcmask 64512   ;;  %v235_v34 = vstv %s393_s6 }
   0x5   :  { %276 = vset.pattern.permute.xlu1 %v303_v4  ;;  %v115_v7 = vld [vmem:[%s390_s3] sm:$0xff]  ;;  %v118_v8 = vld [vmem:[%s391_s4 + $0x8] sm:$0xff] }
   0x6   :  { %268 = vmatprep.mubr.msk.f32.mxu1 %vm129_vm3, %v115_v7  ;;  %126 = vperm.xlu1 %276, %v118_v8   ;;  %v213_v9 = vld [vmem:[%s392_s5] sm:$0xff]  ;;  %v116_v15 = vld [vmem:[%s390_s3 + $0x8] sm:$0xff]  ;;  %s304_s5 = smov [#allocation3]  }
   0x7   :  { %s244_s16 = sshll.u32 %s304_s5, 4  ;;  %s245_s16 = int_to_ptr.vmem [resolvable:$true] %s244_s16 }
   0x8   :  { %121 = vperm.xlu0 %275, %v117_v5   ;;  %s277_s17 = scalar_lea.vmem %s245_s16, 16  ;;  %s281_s18 = scalar_lea.vmem %s245_s16, 32 }
   0x9   :  { %p278_p0 = scmp.ne.s32.totalorder %s245_s16, %s277_s17  ;;  %p282_p1 = scmp.lt.s32.totalorder %s245_s16, %s245_s16 }
   0xa   :  { %217 = vperm.xlu1 %276, %v213_v9   ;;  %p283_p2 = scmp.lt.s32.totalorder %s281_s18, %s277_s17 }
   0xc   :  { %222 = vperm.xlu0 %275, %v214_v6   ;;  %p284_p3 = por %p283_p2, %p282_p1 }
   0xe   :  { %p285_p4 = pnand %p284_p3, %p278_p0 }
  0x83   :  { %v34_v10 = vpop.permute.xlu0 %33 }
  0x85   :  { %v127_v17 = vpop.permute.xlu1 %126 }
  0x87   :  { %v122_v16 = vpop.permute.xlu0 %121 }
  0x89   :  { %v218_v26 = vpop.permute.xlu1 %217 }
  0x8b   :  { %v223_v23 = vpop.permute.xlu0 %222 }
  0xd7   :  { %v110_v11 = vpop.f32.mrb[0].mxu0 }
  0xd8   :  { %v111_v12 = vadd.f32 %v110_v11, %v34_v10  ;;  %v265_v13 = vpop.f32.mrb[1].mxu0 }
  0xda   :  { %v114_v14 = vmax.f32 %v111_v12, 0.0 }
  0xdc   :  { %266 = vmatprep.subr.mxu1 %v114_v14 }
  0xdd   :  { %267 = vmatpush3.msra.mxu1 %v114_v14 }
  0xde   :  { %269 = vmatmul.mubr.msk.f32.vlgmr.msra.gmra.mrb[0].mxu1 %vm129_vm3, %v116_v15 }
 0x1b1   :  { %v270_v18 = vpop.f32.mrb[0].mxu1 }
 0x1b2   :  { %v208_v19 = vadd.f32 %v270_v18, %v127_v17  ;;  %v202_v20 = vpop.f32.mrb[1].mxu1 }
 0x1b3   :  { %v203_v21 = vadd.f32 %v202_v20, %v122_v16 }
 0x1b4   :  { %v212_v22 = vmax.f32 %v208_v19, 0.0 }
 0x1b5   :  { %v211_v24 = vmax.f32 %v203_v21, 0.0 }
 0x1b6   :  { %v226_v25 = vmul.f32 %v223_v23, %v212_v22 }
 0x1b7   :  { %v225_v27 = vmul.f32 %v218_v26, %v211_v24 }
 0x1b9   :  { %v227_v28 = vadd.f32 %v226_v25, %v225_v27 }
 0x1bb   :  { %v228_v29 = vrot.slane %v227_v28, 4 }
 0x1bd   :  { %v229_v30 = vadd.f32 %v228_v29, %v227_v28 }
 0x1bf   :  { %v230_v31 = vrot.slane %v229_v30, 2 }
 0x1c1   :  { %v231_v32 = vadd.f32 %v230_v31, %v229_v30 }
 0x1c3   :  { %v232_v33 = vrot.slane %v231_v32, 1 }
 0x1c5   :  { %v233_v35 = vadd.f32 %v232_v33, %v231_v32 }
 0x1c7   :  { %v236_v36 = vadd.f32 %v235_v34, %v233_v35 }
 0x1c9   :  { %237 = vst [vmem:[#allocation3] sm:$0x1] %v236_v36 }
 0x1ca   :  { %288 = shalt.err (!%p285_p4)
}
 0x1cb   :  { %s289_s21 = scalar_lea.hbm %s394_s7, 16 }
 0x1cc   :  { %p290_p5 = scmp.ne.s32.totalorder %s394_s7, %s289_s21  ;;  %p293_p6 = scmp.lt.u32.totalorder %s289_s21, %s394_s7 }
 0x1ce   :  { %p295_p7 = pnand %p293_p6, %p290_p5 }
 0x1d0   :  { %298 = shalt.err (!%p295_p7)
}
 0x1d1   :  { %247 = dma.vmem_to_hbm [thread:$0]  %s245_s16, 16, %s394_s7, [#allocation4]  }
 0x1d2   :  { %299 = dma.done.wait [#allocation4], 16  }
 0x1d3   :  { %300 = vsyncadd [#allocation4], 4294967280 }
 0x1d4   :  { %251 = vsyncpa [#allocation4], 1 }

</bundles_post_ra>
